<compile_context>
chip_gen: v6e
topology: v6e:2x2x1
jax: 0.10.0
libtpu: 0.0.40
codegen_flags: <defaults>
</compile_context>

<pallas_src>
import functools

import jax
import jax.numpy as jnp
from jax.experimental import pallas as pl
from jax.experimental.pallas import tpu as pltpu


def _round_up(x, m):
    return ((x + m - 1) // m) * m


# ---------------------------------------------------------------------------
# Pallas kernel:  out[i] = relu(d[i] * (sum_k adj[i,k] @ y[k] + y[i]) + b)
# grid = (row tiles i, reduction tiles k); acc_ref is resident across k.
# ---------------------------------------------------------------------------
def gcn_agg_kernel(adj_ref, y_ref, d_ref, b_ref, o_ref, acc_ref):
    i = pl.program_id(0)
    k = pl.program_id(1)

    # MXU matmul.  Inputs are bf16 by default; f32 accumulation via
    # preferred_element_type.  (On v7x, fp8 adj for binary graphs would halve
    # adj bytes again -- TODO(synk): evaluate fp8 adjacency path on v7x.)
    prod = jnp.dot(adj_ref[...], y_ref[...], preferred_element_type=jnp.float32)

    @pl.when(k == 0)
    def _():                       # first partial product: write, no zero-fill
        acc_ref[...] = prod

    @pl.when(k > 0)
    def _():
        acc_ref[...] += prod

    @pl.when(k == i)               # self-loop: at this step y_ref holds y[i]
    def _():
        acc_ref[...] += y_ref[...].astype(jnp.float32)

    @pl.when(k == pl.num_programs(1) - 1)
    def _():                       # fused epilogue: row scale, bias, ReLU
        out = d_ref[...] * acc_ref[...] + b_ref[...]
        o_ref[...] = jnp.maximum(out, 0.0).astype(o_ref.dtype)


@functools.partial(jax.jit, static_argnames=("compute_dtype", "tile_target"))
def graph_convolution_layer(X, adj, weight, bias=None, *,
                            compute_dtype=jnp.bfloat16, tile_target=1024):
    """X: (N, C), adj: (N, N) (layer adds self-loops), weight: (C, F),
    bias: (F,) or None. Returns (N, F) float32."""
    N, C = X.shape
    F_out = weight.shape[1]
    f32 = jnp.float32
    cd = jnp.dtype(compute_dtype)

    # ---- tile selection ----------------------------------------------------
    tile = min(tile_target, _round_up(N, 128))
    if N >= 256:
        # Keep >= 2 row tiles so the "parallel" row axis can shard across
        # both TensorCores on v7x (and balance on a megacore).
        tile = min(tile, _round_up(_round_up(N, 128) // 2, 128))
    Np = _round_up(N, tile)
    Fp = _round_up(F_out, 128)     # lane-dense MXU output / store width
    # TODO(synk): on v6e/v7x pad Fp to 256 when F_out >= 128 (256-wide MXU);
    # left at 128 to avoid doubling padded work for small feature widths.

    # ---- prep in plain XLA (DMA-bound, negligible FLOPs) -------------------
    # Degrees from the ORIGINAL unpadded f32 adjacency -> exact.
    deg = jnp.sum(adj.astype(f32), axis=1) + 1.0        # +1 == added self-loop
    d = (1.0 / jnp.sqrt(deg))[:, None]                  # (N, 1) f32
    xw = jnp.dot(X.astype(f32), weight.astype(f32),
                 precision=jax.lax.Precision.HIGHEST)
    y = (d * xw).astype(cd)                             # (N, F_out)

    # ---- pad / cast at the pallas_call boundary ----------------------------
    # Only N x N copy is the cast+pad of adj into the compute dtype (half the
    # bytes of an f32 copy when cd == bf16); skipped when already aligned.
    if Np == N and adj.dtype == cd:
        adj_p = adj
    else:
        adj_p = jnp.pad(adj.astype(cd), ((0, Np - N), (0, Np - N)))
    y_p = jnp.pad(y, ((0, Np - N), (0, Fp - F_out)))
    d_p = jnp.pad(d, ((0, Np - N), (0, 0)))
    if bias is None:
        b_p = jnp.zeros((1, Fp), f32)
    else:
        b_p = jnp.pad(bias.astype(f32), (0, Fp - F_out)).reshape(1, Fp)

    nrow = Np // tile
    grid = (nrow, Np // tile)
    a_bytes = cd.itemsize

    out_p = pl.pallas_call(
        gcn_agg_kernel,
        out_shape=jax.ShapeDtypeStruct((Np, Fp), f32),
        grid_spec=pltpu.PrefetchScalarGridSpec(
            num_scalar_prefetch=0,
            grid=grid,
            # If a profile shows exposed DMA on the adj stream, bump its spec
            # to pipeline_mode=pl.Buffered(3); default 2 saves VMEM on v7x.
            in_specs=[pl.BlockSpec((tile, tile), lambda i, k: (i, k)),   # adj
                      pl.BlockSpec((tile, Fp), lambda i, k: (k, 0)),     # y[k]
                      pl.BlockSpec((tile, 1), lambda i, k: (i, 0)),      # d[i]
                      pl.BlockSpec((1, Fp), lambda i, k: (0, 0))],       # bias
            out_specs=pl.BlockSpec((tile, Fp), lambda i, k: (i, 0)),
            scratch_shapes=[pltpu.VMEM((tile, Fp), jnp.float32)]),
        compiler_params=pltpu.CompilerParams(
            dimension_semantics=("parallel", "arbitrary")),
        cost_estimate=pl.CostEstimate(
            flops=2 * Np * Np * Fp,
            transcendentals=0,
            bytes_accessed=(Np * Np * a_bytes              # adj read once
                            + nrow * Np * Fp * a_bytes     # y[k] per row tile
                            + Np * Fp * 4 + Np * 4 + Fp * 4)),
    )(adj_p, y_p, d_p, b_p)

    return out_p[:N, :F_out]


def _reference(X, adj, weight, bias):
    # Pure-JAX reference matching the PyTorch forward exactly.
    n = adj.shape[0]
    a_hat = adj + jnp.eye(n, dtype=adj.dtype)
    deg = jnp.sum(a_hat, axis=1)
    d_inv_sqrt = 1.0 / jnp.sqrt(deg)
    adj_norm = d_inv_sqrt[:, None] * a_hat * d_inv_sqrt[None, :]
    out = jnp.dot(jnp.dot(adj_norm, X, precision=jax.lax.Precision.HIGHEST),
                  weight, precision=jax.lax.Precision.HIGHEST)
    if bias is not None:
        out = out + bias
    return jnp.maximum(out, 0.0)


def _make_case(key, n, c, f, binary):
    k1, k2, k3, k4 = jax.random.split(key, 4)
    X = jax.random.normal(k1, (n, c), dtype=jnp.float32)
    raw = jax.random.uniform(k2, (n, n), dtype=jnp.float32)
    sym = (raw + raw.T) * 0.5
    adj = (sym > 0.5).astype(jnp.float32) if binary else sym
    adj = adj * (1.0 - jnp.eye(n, dtype=jnp.float32))   # no self-loops; layer adds them
    w = jax.random.normal(k3, (c, f), dtype=jnp.float32) * 0.1
    b = jax.random.normal(k4, (f,), dtype=jnp.float32) * 0.1
    return X, adj, w, b


if __name__ == "__main__":
    key = jax.random.PRNGKey(0)
    k1, k2 = jax.random.split(key)

    # Case 1: tiny graph, binary adjacency (bf16 adjacency is exact).
    X, adj, w, b = _make_case(k1, 8, 32, 16, binary=True)
    ref = _reference(X, adj, w, b)

    out_bf16 = jax.block_until_ready(graph_convolution_layer(X, adj, w, b))
    assert out_bf16.shape == (8, 16)
    assert jnp.allclose(out_bf16, ref, atol=1e-2, rtol=1e-2), "bf16 mismatch"

    out_f32 = jax.block_until_ready(
        graph_convolution_layer(X, adj, w, b, compute_dtype=jnp.float32))
    assert jnp.allclose(out_f32, ref, atol=2e-4, rtol=2e-4), "f32 mismatch"

    # Case 2: ragged / multi-tile path (N=300 -> 2x2 grid of 256-tiles),
    # weighted adjacency, f32 compute, no bias.
    X2, adj2, w2, _ = _make_case(k2, 300, 64, 48, binary=False)
    ref2 = _reference(X2, adj2, w2, None)
    out2 = jax.block_until_ready(
        graph_convolution_layer(X2, adj2, w2, None, compute_dtype=jnp.float32))
    assert out2.shape == (300, 48)
    assert jnp.allclose(out2, ref2, atol=2e-4, rtol=2e-4), "padded-path mismatch"

    print("KERNEL_OK")
</pallas_src>

<mosaic_0001>
module attributes {stable_mosaic.version = 11 : i64} {
  func.func @gcn_agg_kernel(%arg0: i32, %arg1: i32, %arg2: memref<128x128xbf16, #tpu.memory_space<vmem>>, %arg3: memref<128x128xbf16, #tpu.memory_space<vmem>>, %arg4: memref<128x1xf32, #tpu.memory_space<vmem>>, %arg5: memref<1x128xf32, #tpu.memory_space<vmem>>, %arg6: memref<128x128xf32, #tpu.memory_space<vmem>>, %arg7: memref<128x128xf32, #tpu.memory_space<vmem>>) attributes {dimension_semantics = [#tpu.dimension_semantics<parallel>, #tpu.dimension_semantics<arbitrary>], iteration_bounds = array<i64: 1, 1>, scalar_prefetch = 0 : i64, scratch_operands = 1 : i64, tpu.core_type = #tpu.core_type<tc>, window_params = [{transform_indices = @transform_0, window_bounds = array<i64: 128, 128>}, {transform_indices = @transform_1, window_bounds = array<i64: 128, 128>}, {transform_indices = @transform_2, window_bounds = array<i64: 128, 1>}, {pipeline_mode = #tpu.pipeline_mode<synchronous>, transform_indices = @transform_3, window_bounds = array<i64: 1, 128>}, {transform_indices = @transform_4, window_bounds = array<i64: 128, 128>}]} {
    %c0 = arith.constant 0 : index
    %c0_0 = arith.constant 0 : index
    %0 = vector.load %arg2[%c0, %c0_0] : memref<128x128xbf16, #tpu.memory_space<vmem>>, vector<128x128xbf16>
    %c0_1 = arith.constant 0 : index
    %c0_2 = arith.constant 0 : index
    %1 = vector.load %arg3[%c0_1, %c0_2] : memref<128x128xbf16, #tpu.memory_space<vmem>>, vector<128x128xbf16>
    %cst = arith.constant dense<0.000000e+00> : vector<128x128xf32>
    %2 = tpu.matmul %0, %1, %cst {dimension_numbers = #tpu.dot_dimension_numbers<[1], [0], [0], [1], [0, 0, 1, 1], [], []>} : vector<128x128xbf16>, vector<128x128xbf16>, vector<128x128xf32> -> vector<128x128xf32>
    %c0_i32 = arith.constant 0 : i32
    %3 = arith.cmpi eq, %arg1, %c0_i32 : i32
    %4 = arith.extui %3 : i1 to i32
    %c0_i32_3 = arith.constant 0 : i32
    %5 = arith.cmpi ne, %4, %c0_i32_3 : i32
    scf.if %5 {
      %c0_9 = arith.constant 0 : index
      %c0_10 = arith.constant 0 : index
      %15 = vector.load %arg7[%c0_9, %c0_10] : memref<128x128xf32, #tpu.memory_space<vmem>>, vector<128x128xf32>
      tpu.vector_store %arg7[%c0_9, %c0_10], %2 {strides = array<i32>} : memref<128x128xf32, #tpu.memory_space<vmem>>, vector<128x128xf32>,
    } else {
    }
    %c0_i32_4 = arith.constant 0 : i32
    %6 = arith.cmpi sgt, %arg1, %c0_i32_4 : i32
    %7 = arith.extui %6 : i1 to i32
    %c0_i32_5 = arith.constant 0 : i32
    %8 = arith.cmpi ne, %7, %c0_i32_5 : i32
    scf.if %8 {
      %c0_9 = arith.constant 0 : index
      %c0_10 = arith.constant 0 : index
      %15 = vector.load %arg7[%c0_9, %c0_10] : memref<128x128xf32, #tpu.memory_space<vmem>>, vector<128x128xf32>
      %16 = arith.addf %15, %2 : vector<128x128xf32>
      %c0_11 = arith.constant 0 : index
      %c0_12 = arith.constant 0 : index
      %17 = vector.load %arg7[%c0_11, %c0_12] : memref<128x128xf32, #tpu.memory_space<vmem>>, vector<128x128xf32>
      tpu.vector_store %arg7[%c0_11, %c0_12], %16 {strides = array<i32>} : memref<128x128xf32, #tpu.memory_space<vmem>>, vector<128x128xf32>,
    } else {
    }
    %9 = arith.cmpi eq, %arg1, %arg0 : i32
    %10 = arith.extui %9 : i1 to i32
    %c0_i32_6 = arith.constant 0 : i32
    %11 = arith.cmpi ne, %10, %c0_i32_6 : i32
    scf.if %11 {
      %c0_9 = arith.constant 0 : index
      %c0_10 = arith.constant 0 : index
      %15 = vector.load %arg7[%c0_9, %c0_10] : memref<128x128xf32, #tpu.memory_space<vmem>>, vector<128x128xf32>
      %c0_11 = arith.constant 0 : index
      %c0_12 = arith.constant 0 : index
      %16 = vector.load %arg3[%c0_11, %c0_12] : memref<128x128xbf16, #tpu.memory_space<vmem>>, vector<128x128xbf16>
      %17 = arith.extf %16 : vector<128x128xbf16> to vector<128x128xf32>
      %18 = arith.addf %15, %17 : vector<128x128xf32>
      %c0_13 = arith.constant 0 : index
      %c0_14 = arith.constant 0 : index
      %19 = vector.load %arg7[%c0_13, %c0_14] : memref<128x128xf32, #tpu.memory_space<vmem>>, vector<128x128xf32>
      tpu.vector_store %arg7[%c0_13, %c0_14], %18 {strides = array<i32>} : memref<128x128xf32, #tpu.memory_space<vmem>>, vector<128x128xf32>,
    } else {
    }
    %c0_i32_7 = arith.constant 0 : i32
    %12 = arith.cmpi eq, %arg1, %c0_i32_7 : i32
    %13 = arith.extui %12 : i1 to i32
    %c0_i32_8 = arith.constant 0 : i32
    %14 = arith.cmpi ne, %13, %c0_i32_8 : i32
    scf.if %14 {
      %c0_9 = arith.constant 0 : index
      %c0_10 = arith.constant 0 : index
      %15 = vector.load %arg4[%c0_9, %c0_10] : memref<128x1xf32, #tpu.memory_space<vmem>>, vector<128x1xf32>
      %c0_11 = arith.constant 0 : index
      %c0_12 = arith.constant 0 : index
      %16 = vector.load %arg7[%c0_11, %c0_12] : memref<128x128xf32, #tpu.memory_space<vmem>>, vector<128x128xf32>
      %17 = vector.broadcast %15 : vector<128x1xf32> to vector<128x128xf32>
      %18 = arith.mulf %17, %16 : vector<128x128xf32>
      %c0_13 = arith.constant 0 : index
      %c0_14 = arith.constant 0 : index
      %19 = vector.load %arg5[%c0_13, %c0_14] : memref<1x128xf32, #tpu.memory_space<vmem>>, vector<1x128xf32>
      %20 = vector.broadcast %19 : vector<1x128xf32> to vector<128x128xf32>
      %21 = arith.addf %18, %20 : vector<128x128xf32>
      %cst_15 = arith.constant 0.000000e+00 : f32
      %22 = vector.broadcast %cst_15 : f32 to vector<128x128xf32>
      %23 = arith.maximumf %21, %22 : vector<128x128xf32>
      %c0_16 = arith.constant 0 : index
      %c0_17 = arith.constant 0 : index
      %24 = vector.load %arg6[%c0_16, %c0_17] : memref<128x128xf32, #tpu.memory_space<vmem>>, vector<128x128xf32>
      tpu.vector_store %arg6[%c0_16, %c0_17], %23 {strides = array<i32>} : memref<128x128xf32, #tpu.memory_space<vmem>>, vector<128x128xf32>,
    } else {
    }
    return
  }
  func.func @transform_0(%arg0: i32, %arg1: i32) -> (i32, i32) {
    %c0_i32 = arith.constant 0 : i32
    return %arg0, %arg1 : i32, i32
  }
  func.func @transform_1(%arg0: i32, %arg1: i32) -> (i32, i32) {
    %c0_i32 = arith.constant 0 : i32
    %c0_i32_0 = arith.constant 0 : i32
    return %arg1, %c0_i32 : i32, i32
  }
  func.func @transform_2(%arg0: i32, %arg1: i32) -> (i32, i32) {
    %c0_i32 = arith.constant 0 : i32
    %c0_i32_0 = arith.constant 0 : i32
    return %arg0, %c0_i32 : i32, i32
  }
  func.func @transform_3(%arg0: i32, %arg1: i32) -> (i32, i32) {
    %c0_i32 = arith.constant 0 : i32
    %c0_i32_0 = arith.constant 0 : i32
    %c0_i32_1 = arith.constant 0 : i32
    return %c0_i32, %c0_i32_0 : i32, i32
  }
  func.func @transform_4(%arg0: i32, %arg1: i32) -> (i32, i32) {
    %c0_i32 = arith.constant 0 : i32
    %c0_i32_0 = arith.constant 0 : i32
    return %arg0, %c0_i32 : i32, i32
  }
}

</mosaic_0001>

<bundles_post_ra>
// kernel: graph_convolution_layer.1
= control target key start
LH: loop header
LB: loop body
LE: loop exit
PB: predicated region body
PF: predicated region fallthrough
CT: control target
= control target key end

     0   :  { %v728_v1 = vmov 0   ;;  %s977_s1 = inlined_call_operand.vmem [shape: bf16[128,128], index: 1, kind: input, shape index: {}]   ;;  %s978_s0 = inlined_call_operand.vmem [shape: bf16[128,128], index: 0, kind: input, shape index: {}]   ;;  %s979_s2 = inlined_call_operand.vmem [shape: f32[128,1], index: 2, kind: input, shape index: {}]   ;;  %s980_s3 = inlined_call_operand.vmem [shape: f32[1,128], index: 3, kind: input, shape index: {}]   ;;  %s981_s4 = inlined_call_operand.vmem [shape: f32[128,128], index: 4, kind: output, shape index: {}]  }
   0x1   :  { %v712_v0 = vld [vmem:[%s977_s1 + $0x38] sm:$0xff]   ;;  %711 = vset.pattern.permute.xlu1 %v728_v1  ;;  %710 = vset.pattern.permute.xlu0 %v728_v1  ;;  %v713_v2 = vld [vmem:[%s977_s1 + $0x30] sm:$0xff]   ;;  %v714_v3 = vld [vmem:[%s977_s1 + $0x28] sm:$0xff]  }
   0x2   :  { %661 = vmatprep.subr.bf16.mxu0 %v712_v0  ;;  %693 = vmatprep.subr.bf16.mxu1 %v712_v0  ;;  %v715_v4 = vld [vmem:[%s977_s1 + $0x20] sm:$0xff]   ;;  %v716_v7 = vld [vmem:[%s977_s1 + $0x18] sm:$0xff]   ;;  %v717_v8 = vld [vmem:[%s977_s1 + $0x10] sm:$0xff]  }
   0x3   :  { %662 = vmatpush3.bf16.msra.mxu0 %v712_v0  ;;  %701 = vmatpush3.bf16.msra.mxu1 %v712_v0  ;;  %v720_v5 = vld [vmem:[%s978_s0] sm:$0xff]   ;;  %v404_v9 = vld [vmem:[%s979_s2 + $0x10] sm:$0xff]  ;;  %v405_v11 = vld [vmem:[%s979_s2 + $0x18] sm:$0xff] }
   0x4   :  { %663 = vmatprep.subr.bf16.mxu0 %v713_v2  ;;  %694 = vmatprep.subr.bf16.mxu1 %v713_v2  ;;  %v721_v6 = vld [vmem:[%s978_s0 + $0x20] sm:$0xff]   ;;  %v403_v12 = vld [vmem:[%s979_s2 + $0x8] sm:$0xff]  ;;  %v409_v17 = vld [vmem:[%s979_s2 + $0x38] sm:$0xff] }
   0x5   :  { %677 = vmatprep.mubr.bf16.mxu0 %v720_v5  ;;  %685 = vmatprep.mubr.bf16.mxu1 %v721_v6  ;;  %v402_v10 = vld [vmem:[%s979_s2] sm:$0xff]  ;;  %v718_v13 = vld [vmem:[%s977_s1 + $0x8] sm:$0xff]   ;;  %v408_v18 = vld [vmem:[%s979_s2 + $0x30] sm:$0xff] }
   0x6   :  { %446 = vperm.xlu1 %711, %v404_v9   ;;  %436 = vperm.xlu0 %710, %v402_v10   ;;  %v407_v14 = vld [vmem:[%s979_s2 + $0x28] sm:$0xff]  ;;  %v406_v15 = vld [vmem:[%s979_s2 + $0x20] sm:$0xff]  ;;  %v724_v23 = vld [vmem:[%s978_s0 + $0x10] sm:$0xff]  }
   0x7   :  { %664 = vmatpush3.bf16.msra.mxu0 %v713_v2  ;;  %702 = vmatpush3.bf16.msra.mxu1 %v713_v2  ;;  %v719_v16 = vld [vmem:[%s977_s1] sm:$0xff]   ;;  %v722_v19 = vld [vmem:[%s978_s0 + $0x8] sm:$0xff]   ;;  %v725_v24 = vld [vmem:[%s978_s0 + $0x30] sm:$0xff]  }
   0x8   :  { %665 = vmatprep.subr.bf16.mxu0 %v714_v3  ;;  %695 = vmatprep.subr.bf16.mxu1 %v714_v3  ;;  %v723_v20 = vld [vmem:[%s978_s0 + $0x28] sm:$0xff]   ;;  %v410_v22 = vld [vmem:[%s979_s2 + $0x40] sm:$0xff]  ;;  %v413_v25 = vld [vmem:[%s979_s2 + $0x58] sm:$0xff] }
   0x9   :  { %v411_v21 = vld [vmem:[%s979_s2 + $0x48] sm:$0xff]  ;;  %v412_v26 = vld [vmem:[%s979_s2 + $0x50] sm:$0xff]  ;;  %v726_v27 = vld [vmem:[%s978_s0 + $0x18] sm:$0xff]  }
   0xa   :  { %451 = vperm.xlu1 %711, %v405_v11   ;;  %441 = vperm.xlu0 %710, %v403_v12   ;;  %v727_v28 = vld [vmem:[%s978_s0 + $0x38] sm:$0xff]   ;;  %v415_v29 = vld [vmem:[%s979_s2 + $0x68] sm:$0xff]  ;;  %v414_v30 = vld [vmem:[%s979_s2 + $0x60] sm:$0xff] }
   0xb   :  { %666 = vmatpush3.bf16.msra.mxu0 %v714_v3  ;;  %703 = vmatpush3.bf16.msra.mxu1 %v714_v3  ;;  %v417_v31 = vld [vmem:[%s979_s2 + $0x78] sm:$0xff]  ;;  %v416_v32 = vld [vmem:[%s979_s2 + $0x70] sm:$0xff]  ;;  %v638_v42 = vld [vmem:[%s977_s1 + $0x8] sm:$0xff]  }
   0xc   :  { %667 = vmatprep.subr.bf16.mxu0 %v715_v4  ;;  %696 = vmatprep.subr.bf16.mxu1 %v715_v4  ;;  %v642_v43 = vld [vmem:[%s977_s1 + $0x28] sm:$0xff]   ;;  %v607_v44 = vld [vmem:[%s977_s1] sm:$0xff]   ;;  %v612_v48 = vunpack.c.l.bf16 %v638_v42  ;;  %v877_v52 = vld [vmem:[%s977_s1 + $0x18] sm:$0xff]   ;;  %v613_v58 = vunpack.c.h.bf16 %v638_v42 }
   0xd   :  { %v641_v45 = vld [vmem:[%s977_s1 + $0x20] sm:$0xff]   ;;  %v628_v49 = vunpack.c.l.bf16 %v642_v43  ;;  %v608_v50 = vunpack.c.l.bf16 %v607_v44  ;;  %v882_v53 = vld [vmem:[%s977_s1 + $0x38] sm:$0xff]   ;;  %v629_v59 = vunpack.c.h.bf16 %v642_v43  ;;  %v887_v60 = vld [vmem:[%s977_s1 + $0x10] sm:$0xff]   ;;  %v609_v1 = vunpack.c.h.bf16 %v607_v44 }
   0xe   :  { %461 = vperm.xlu1 %711, %v407_v14   ;;  %456 = vperm.xlu0 %710, %v406_v15   ;;  %v624_v51 = vunpack.c.l.bf16 %v641_v45  ;;  %v892_v61 = vld [vmem:[%s977_s1 + $0x30] sm:$0xff]   ;;  %v897_v62 = vld [vmem:[%s980_s3] ss:$0 sm:$0xff]  ;;  %v625_v2 = vunpack.c.h.bf16 %v641_v45  ;;  %v620_v3 = vunpack.c.l.bf16 %v877_v52  ;;  %v621_v15 = vunpack.c.h.bf16 %v877_v52 }
   0xf   :  { %668 = vmatpush3.bf16.msra.mxu0 %v715_v4  ;;  %704 = vmatpush3.bf16.msra.mxu1 %v715_v4  ;;  %v636_v4 = vunpack.c.l.bf16 %v882_v53  ;;  %v632_v14 = vunpack.c.l.bf16 %v892_v61 }
  0x10   :  { %669 = vmatprep.subr.bf16.mxu0 %v716_v7  ;;  %697 = vmatprep.subr.bf16.mxu1 %v716_v7 }
  0x12   :  { %471 = vperm.xlu1 %711, %v409_v17   ;;  %466 = vperm.xlu0 %710, %v408_v18  }
  0x13   :  { %670 = vmatpush3.bf16.msra.mxu0 %v716_v7  ;;  %705 = vmatpush3.bf16.msra.mxu1 %v716_v7 }
  0x14   :  { %671 = vmatprep.subr.bf16.mxu0 %v717_v8  ;;  %698 = vmatprep.subr.bf16.mxu1 %v717_v8 }
  0x16   :  { %481 = vperm.xlu1 %711, %v411_v21   ;;  %476 = vperm.xlu0 %710, %v410_v22  }
  0x17   :  { %672 = vmatpush3.bf16.msra.mxu0 %v717_v8  ;;  %706 = vmatpush3.bf16.msra.mxu1 %v717_v8 }
  0x18   :  { %673 = vmatprep.subr.bf16.mxu0 %v718_v13  ;;  %699 = vmatprep.subr.bf16.mxu1 %v718_v13 }
  0x1a   :  { %491 = vperm.xlu1 %711, %v413_v25   ;;  %486 = vperm.xlu0 %710, %v412_v26   ;;  %v617_v25 = vunpack.c.h.bf16 %v887_v60  ;;  %v633_v26 = vunpack.c.h.bf16 %v892_v61 }
  0x1b   :  { %674 = vmatpush3.bf16.msra.mxu0 %v718_v13  ;;  %707 = vmatpush3.bf16.msra.mxu1 %v718_v13  ;;  %v616_v13 = vunpack.c.l.bf16 %v887_v60 }
  0x1c   :  { %675 = vmatprep.subr.bf16.mxu0 %v719_v16  ;;  %700 = vmatprep.subr.bf16.mxu1 %v719_v16 }
  0x1e   :  { %501 = vperm.xlu1 %711, %v415_v29   ;;  %496 = vperm.xlu0 %710, %v414_v30  }
  0x1f   :  { %676 = vmatpush3.bf16.msra.mxu0 %v719_v16  ;;  %708 = vmatpush3.bf16.msra.mxu1 %v719_v16  ;;  %v637_v16 = vunpack.c.h.bf16 %v882_v53 }
  0x22   :  { %678 = vmatmul.mubr.bf16.vlgmr.msra.gmra.mxu0 %v722_v19  ;;  %686 = vmatmul.mubr.bf16.vlgmr.msra.gmra.mxu1 %v723_v20 }
  0x23   :  { %681 = vmatprep.mubr.bf16.mxu0 %v724_v23  ;;  %689 = vmatprep.mubr.bf16.mxu1 %v725_v24 }
  0x24   :  { %511 = vperm.xlu1 %711, %v417_v31   ;;  %506 = vperm.xlu0 %710, %v416_v32  }
  0x2a   :  { %682 = vmatmul.mubr.bf16.gmra.mxu0 %v726_v27  ;;  %690 = vmatmul.mubr.bf16.gmra.mxu1 %v727_v28 }
  0x81   :  { %v437_v33 = vpop.permute.xlu0 %436  ;;  %v447_v34 = vpop.permute.xlu1 %446 }
  0x85   :  { %v850_v35 = vpop.permute.xlu0 %441  ;;  %v452_v36 = vpop.permute.xlu1 %451 }
  0x89   :  { %v852_v37 = vpop.permute.xlu0 %456  ;;  %v854_v38 = vpop.permute.xlu1 %461 }
  0x8d   :  { %v856_v39 = vpop.permute.xlu0 %466  ;;  %v858_v40 = vpop.permute.xlu1 %471 }
  0x91   :  { %v477_v41 = vpop.permute.xlu0 %476  ;;  %v872_v46 = vpop.permute.xlu1 %481 }
  0x95   :  { %v487_v47 = vpop.permute.xlu0 %486  ;;  %v492_v5 = vpop.permute.xlu1 %491 }
  0x99   :  { %v497_v6 = vpop.permute.xlu0 %496  ;;  %v502_v43 = vpop.permute.xlu1 %501 }
  0x9f   :  { %v507_v44 = vpop.permute.xlu0 %506 }
  0xe2   :  { %v679_v54 = vpop.f32.mrf.mxu0  ;;  %v687_v55 = vpop.f32.mrf.mxu1 }
  0xe3   :  { %v369_v56 = vadd.f32 %v679_v54, %v612_v48  ;;  %v377_v57 = vadd.f32 %v687_v55, %v628_v49 }
  0xe4   :  { %v180_v63 = vpop.f32.mrf.mxu0  ;;  %v212_v0 = vpop.f32.mrf.mxu1 }
  0xe5   :  { %v516_v7 = vmul.f32 %v447_v34, %v369_v56  ;;  %v524_v8 = vmul.f32 %v487_v47, %v377_v57  ;;  %v367_v9 = vadd.f32 %v608_v50, %v180_v63  ;;  %v375_v10 = vadd.f32 %v624_v51, %v212_v0 }
  0xe6   :  { %v680_v11 = vpop.f32.mrf.mxu0  ;;  %v688_v12 = vpop.f32.mrf.mxu1 }
  0xe7   :  { %v539_v17 = vadd.f32 %v897_v62, %v516_v7  ;;  %v547_v18 = vadd.f32 %v897_v62, %v524_v8  ;;  %v514_v19 = vmul.f32 %v437_v33, %v367_v9  ;;  %v522_v20 = vmul.f32 %v477_v41, %v375_v10  ;;  %v512_v10 = vpop.permute.xlu1 %511 }
  0xe8   :  { %v370_v21 = vadd.f32 %v680_v11, %v613_v58  ;;  %v378_v22 = vadd.f32 %v688_v12, %v629_v59  ;;  %v183_v23 = vpop.f32.mrf.mxu0  ;;  %v215_v24 = vpop.f32.mrf.mxu1 }
  0xe9   :  { %v555_v27 = vmax.f32 %v539_v17, 0.0  ;;  %v563_v28 = vmax.f32 %v547_v18, 0.0  ;;  %v537_v29 = vadd.f32 %v897_v62, %v514_v19  ;;  %v545_v30 = vadd.f32 %v897_v62, %v522_v20 }
  0xea   :  { %v517_v31 = vmul.f32 %v452_v36, %v370_v21  ;;  %v525_v32 = vmul.f32 %v492_v5, %v378_v22  ;;  %v368_v34 = vadd.f32 %v609_v1, %v183_v23  ;;  %v376_v42 = vadd.f32 %v625_v2, %v215_v24  ;;  %v683_v33 = vpop.f32.mrf.mxu0  ;;  %v691_v41 = vpop.f32.mrf.mxu1 }
  0xeb   :  { %571 = vst [vmem:[%s981_s4 + $0x10] sm:$0xff] %v555_v27  ;;  %579 = vst [vmem:[%s981_s4 + $0x50] sm:$0xff] %v563_v28  ;;  %v553_v45 = vmax.f32 %v537_v29, 0.0  ;;  %v561_v47 = vmax.f32 %v545_v30, 0.0  ;;  %v373_v48 = vadd.f32 %v683_v33, %v620_v3  ;;  %v381_v49 = vadd.f32 %v691_v41, %v636_v4 }
  0xec   :  { %v540_v36 = vadd.f32 %v897_v62, %v517_v31  ;;  %v548_v50 = vadd.f32 %v897_v62, %v525_v32  ;;  %v515_v51 = vmul.f32 %v850_v35, %v368_v34  ;;  %v523_v52 = vmul.f32 %v872_v46, %v376_v42  ;;  %v196_v53 = vpop.f32.mrf.mxu0  ;;  %v228_v54 = vpop.f32.mrf.mxu1 }
  0xed   :  { %569 = vst [vmem:[%s981_s4] sm:$0xff] %v553_v45  ;;  %577 = vst [vmem:[%s981_s4 + $0x40] sm:$0xff] %v561_v47  ;;  %v520_v55 = vmul.f32 %v856_v39, %v373_v48  ;;  %v528_v56 = vmul.f32 %v507_v44, %v381_v49  ;;  %v371_v57 = vadd.f32 %v616_v13, %v196_v53 }
  0xee   :  { %v379_v58 = vadd.f32 %v632_v14, %v228_v54  ;;  %v556_v59 = vmax.f32 %v540_v36, 0.0  ;;  %v564_v60 = vmax.f32 %v548_v50, 0.0  ;;  %v538_v35 = vadd.f32 %v897_v62, %v515_v51  ;;  %v684_v61 = vpop.f32.mrf.mxu0  ;;  %v692_v63 = vpop.f32.mrf.mxu1 }
  0xef   :  { %v546_v46 = vadd.f32 %v897_v62, %v523_v52  ;;  %v543_v0 = vadd.f32 %v897_v62, %v520_v55  ;;  %v551_v1 = vadd.f32 %v897_v62, %v528_v56  ;;  %v518_v2 = vmul.f32 %v852_v37, %v371_v57 }
  0xf0   :  { %v526_v3 = vmul.f32 %v497_v6, %v379_v58  ;;  %572 = vst [vmem:[%s981_s4 + $0x18] sm:$0xff] %v556_v59  ;;  %580 = vst [vmem:[%s981_s4 + $0x58] sm:$0xff] %v564_v60  ;;  %v554_v39 = vmax.f32 %v538_v35, 0.0  ;;  %v374_v5 = vadd.f32 %v684_v61, %v621_v15  ;;  %v382_v7 = vadd.f32 %v692_v63, %v637_v16  ;;  %v199_v8 = vpop.f32.mrf.mxu0  ;;  %v231_v9 = vpop.f32.mrf.mxu1 }
  0xf1   :  { %v562_v4 = vmax.f32 %v546_v46, 0.0  ;;  %v559_v11 = vmax.f32 %v543_v0, 0.0  ;;  %v567_v12 = vmax.f32 %v551_v1, 0.0  ;;  %v541_v37 = vadd.f32 %v897_v62, %v518_v2 }
  0xf2   :  { %v549_v6 = vadd.f32 %v897_v62, %v526_v3  ;;  %570 = vst [vmem:[%s981_s4 + $0x8] sm:$0xff] %v554_v39  ;;  %v521_v13 = vmul.f32 %v858_v40, %v374_v5  ;;  %v529_v14 = vmul.f32 %v512_v10, %v382_v7  ;;  %v372_v15 = vadd.f32 %v617_v25, %v199_v8 }
  0xf3   :  { %578 = vst [vmem:[%s981_s4 + $0x48] sm:$0xff] %v562_v4  ;;  %v380_v16 = vadd.f32 %v633_v26, %v231_v9  ;;  %575 = vst [vmem:[%s981_s4 + $0x30] sm:$0xff] %v559_v11  ;;  %v557_v17 = vmax.f32 %v541_v37, 0.0 }
  0xf4   :  { %583 = vst [vmem:[%s981_s4 + $0x70] sm:$0xff] %v567_v12  ;;  %v565_v18 = vmax.f32 %v549_v6, 0.0  ;;  %v544_v19 = vadd.f32 %v897_v62, %v521_v13  ;;  %v552_v20 = vadd.f32 %v897_v62, %v529_v14  ;;  %v519_v21 = vmul.f32 %v854_v38, %v372_v15 }
  0xf5   :  { %v527_v40 = vmul.f32 %v502_v43, %v380_v16  ;;  %573 = vst [vmem:[%s981_s4 + $0x20] sm:$0xff] %v557_v17 }
  0xf6   :  { %581 = vst [vmem:[%s981_s4 + $0x60] sm:$0xff] %v565_v18  ;;  %v560_v22 = vmax.f32 %v544_v19, 0.0  ;;  %v568_v23 = vmax.f32 %v552_v20, 0.0  ;;  %v542_v24 = vadd.f32 %v897_v62, %v519_v21 }
  0xf7   :  { %v550_v25 = vadd.f32 %v897_v62, %v527_v40 }
  0xf8   :  { %576 = vst [vmem:[%s981_s4 + $0x38] sm:$0xff] %v560_v22  ;;  %584 = vst [vmem:[%s981_s4 + $0x78] sm:$0xff] %v568_v23  ;;  %v558_v38 = vmax.f32 %v542_v24, 0.0 }
  0xf9   :  { %v566_v26 = vmax.f32 %v550_v25, 0.0 }
  0xfa   :  { %574 = vst [vmem:[%s981_s4 + $0x28] sm:$0xff] %v558_v38 }
  0xfb   :  { %582 = vst [vmem:[%s981_s4 + $0x68] sm:$0xff] %v566_v26 }

</bundles_post_ra>
